<compile_context>
chip_gen: v6e
topology: v6e:2x2x1
jax: 0.10.0
libtpu: 0.0.40
codegen_flags: <defaults>
</compile_context>

<pallas_src>
import jax
import jax.numpy as jnp
from jax.experimental import pallas as pl
from jax.experimental.pallas import tpu as pltpu


# ---------------------------------------------------------------------------
# Small differentiable helpers (plain JAX — tiny tensors, off the hot path).
# ---------------------------------------------------------------------------
def _inv3x3(m):
    """Batched analytic 3x3 inverse (adjugate / det). Differentiable."""
    a, b, c = m[..., 0, 0], m[..., 0, 1], m[..., 0, 2]
    d, e, f = m[..., 1, 0], m[..., 1, 1], m[..., 1, 2]
    g, h, i = m[..., 2, 0], m[..., 2, 1], m[..., 2, 2]
    c00 = e * i - f * h
    c01 = -(d * i - f * g)
    c02 = d * h - e * g
    c10 = -(b * i - c * h)
    c11 = a * i - c * g
    c12 = -(a * h - b * g)
    c20 = b * f - c * e
    c21 = -(a * f - c * d)
    c22 = a * e - b * d
    det = a * c00 + b * c01 + c * c02
    adj = jnp.stack([
        jnp.stack([c00, c10, c20], axis=-1),
        jnp.stack([c01, c11, c21], axis=-1),
        jnp.stack([c02, c12, c22], axis=-1),
    ], axis=-2)
    return adj / det[..., None, None]


def _src_coords(minv, H, W):
    """Per-pixel source sampling coordinates (pixel convention,
    align_corners=True): src = M^{-1} @ [x, y, 1]^T, with the kornia-style
    homogeneous divide (coordinates left unscaled when |z| <= eps, instead of
    clamping the denominator, which would flip signs near the horizon)."""
    HW = H * W
    p = jnp.arange(HW)
    px = (p % W).astype(jnp.float32)
    py = (p // W).astype(jnp.float32)
    coords = jnp.stack([px, py, jnp.ones_like(px)], axis=0)        # (3, HW)
    src = jnp.einsum('bij,jp->bip', minv, coords)                  # (B, 3, HW)
    z = src[:, 2]
    eps = 1e-8
    safe = jnp.abs(z) > eps
    z_safe = jnp.where(safe, z, jnp.ones_like(z))
    scale = jnp.where(safe, 1.0 / z_safe, jnp.ones_like(z))
    return jnp.stack([src[:, 0] * scale, src[:, 1] * scale], axis=1)   # (B, 2, HW)


# ---------------------------------------------------------------------------
# Pallas kernels
# ---------------------------------------------------------------------------
def _warp_fwd_kernel(sxy_ref, qxy_ref, x_ref, o_ref):
    # Source sample coordinates for this output-pixel tile (lanes).
    sx = sxy_ref[0, 0:1, :]                       # (1, TILE_P)
    sy = sxy_ref[0, 1:2, :]
    # Source-grid pixel coordinates (batch-invariant, hoisted to an input).
    qx = qxy_ref[:, 0:1]                          # (HW_in, 1)
    qy = qxy_ref[:, 1:2]
    # Bilinear tent weights; zero weight outside the image reproduces
    # grid_sample's padding_mode='zeros'.
    wx = jnp.maximum(0.0, 1.0 - jnp.abs(sx - qx))     # (HW_in, TILE_P)
    wy = jnp.maximum(0.0, 1.0 - jnp.abs(sy - qy))
    a = (wx * wy).astype(jnp.bfloat16)
    # (C, HW_in) @ (HW_in, TILE_P) on the MXU, bf16 operands, f32 accumulate.
    o_ref[0] = jnp.dot(x_ref[0].astype(jnp.bfloat16), a,
                       preferred_element_type=jnp.float32).astype(o_ref.dtype)


def _warp_bwd_kernel(sxy_ref, qxy_ref, x_ref, g_ref, gT_ref, dxT_ref, dsxy_ref):
    p_idx = pl.program_id(1)

    sx = sxy_ref[0, 0:1, :]                       # (1, TILE_P)
    sy = sxy_ref[0, 1:2, :]
    qx = qxy_ref[:, 0:1]                          # (HW_in, 1)
    qy = qxy_ref[:, 1:2]

    ddx = sx - qx                                 # (HW_in, TILE_P)
    ddy = sy - qy
    ax = jnp.abs(ddx)
    ay = jnp.abs(ddy)
    wx = jnp.maximum(0.0, 1.0 - ax)
    wy = jnp.maximum(0.0, 1.0 - ay)
    # d/dsx relu(1 - |sx - qx|)  (value at the measure-zero kinks is arbitrary)
    dwx = jnp.where(ax < 1.0, jnp.where(ddx >= 0.0, -1.0, 1.0), 0.0)
    dwy = jnp.where(ay < 1.0, jnp.where(ddy >= 0.0, -1.0, 1.0), 0.0)

    xb = x_ref[0].astype(jnp.bfloat16)            # (C, HW_in)
    g = g_ref[0]                                  # (C, TILE_P) f32
    gTb = gT_ref[0].astype(jnp.bfloat16)          # (TILE_P, C)

    # dL/dx (stored transposed, (HW_in, C)):  dxT[q, c] = sum_p A[q, p] g[c, p]
    a_b = (wx * wy).astype(jnp.bfloat16)          # (HW_in, TILE_P)
    contrib = jnp.dot(a_b, gTb, preferred_element_type=jnp.float32)   # (HW_in, C)

    @pl.when(p_idx == 0)
    def _():
        dxT_ref[0] = contrib

    @pl.when(p_idx != 0)
    def _():
        dxT_ref[0] = dxT_ref[0] + contrib

    # dL/dsx[p] = sum_c g[c,p] * (x @ (wy * dwx))[c,p]   (and similarly dsy).
    ux = (wy * dwx).astype(jnp.bfloat16)
    uy = (wx * dwy).astype(jnp.bfloat16)
    xs = jnp.dot(xb, ux, preferred_element_type=jnp.float32)   # (C, TILE_P)
    ys = jnp.dot(xb, uy, preferred_element_type=jnp.float32)
    dsxy_ref[0, 0:1, :] = jnp.sum(g * xs, axis=0, keepdims=True)
    dsxy_ref[0, 1:2, :] = jnp.sum(g * ys, axis=0, keepdims=True)


def make_warp_sampler(H, W):
    """Returns warp_sample(x_flat, sxy) -> (B, C, H*W) with a Pallas forward
    and a Pallas custom-VJP backward (dL/dx, dL/d(sx,sy))."""
    HW = H * W
    TILE_P = 128 if HW % 128 == 0 else HW
    n_p = HW // TILE_P

    q = jnp.arange(HW, dtype=jnp.int32)
    qxy = jnp.stack([(q % W).astype(jnp.float32),
                     (q // W).astype(jnp.float32)], axis=1)        # (HW, 2)

    def fwd_call(x_flat, sxy):
        B, C, _ = x_flat.shape
        return pl.pallas_call(
            _warp_fwd_kernel,
            out_shape=jax.ShapeDtypeStruct((B, C, HW), jnp.float32),
            grid=(B, n_p),
            in_specs=[
                pl.BlockSpec((1, 2, TILE_P), lambda b, p: (b, 0, p)),
                pl.BlockSpec((HW, 2), lambda b, p: (0, 0)),
                pl.BlockSpec((1, C, HW), lambda b, p: (b, 0, 0)),
            ],
            out_specs=pl.BlockSpec((1, C, TILE_P), lambda b, p: (b, 0, p)),
            compiler_params=pltpu.CompilerParams(
                dimension_semantics=("parallel", "parallel")),
        )(sxy, qxy, x_flat)

    def bwd_call(sxy, x_flat, g, gT):
        B, C, _ = x_flat.shape
        return pl.pallas_call(
            _warp_bwd_kernel,
            out_shape=(jax.ShapeDtypeStruct((B, HW, C), jnp.float32),
                       jax.ShapeDtypeStruct((B, 2, HW), jnp.float32)),
            grid=(B, n_p),
            in_specs=[
                pl.BlockSpec((1, 2, TILE_P), lambda b, p: (b, 0, p)),
                pl.BlockSpec((HW, 2), lambda b, p: (0, 0)),
                pl.BlockSpec((1, C, HW), lambda b, p: (b, 0, 0)),
                pl.BlockSpec((1, C, TILE_P), lambda b, p: (b, 0, p)),
                pl.BlockSpec((1, TILE_P, C), lambda b, p: (b, p, 0)),
            ],
            out_specs=(
                # dxT is accumulated across p-tiles (revisited output block).
                pl.BlockSpec((1, HW, C), lambda b, p: (b, 0, 0)),
                pl.BlockSpec((1, 2, TILE_P), lambda b, p: (b, 0, p)),
            ),
            compiler_params=pltpu.CompilerParams(
                dimension_semantics=("parallel", "arbitrary")),
        )(sxy, qxy, x_flat, g, gT)

    @jax.custom_vjp
    def warp_sample(x_flat, sxy):
        return fwd_call(x_flat, sxy)

    def _fwd(x_flat, sxy):
        return fwd_call(x_flat, sxy), (x_flat, sxy)

    def _bwd(res, ct):
        x_flat, sxy = res
        gT = jnp.swapaxes(ct, 1, 2)                     # (B, HW, C), tiny
        dxT, dsxy = bwd_call(sxy, x_flat, ct, gT)
        return jnp.swapaxes(dxT, 1, 2), dsxy

    warp_sample.defvjp(_fwd, _bwd)
    return warp_sample


# ---------------------------------------------------------------------------
# Pure-JAX reference of the same sampling step (used only for sanity checks).
# ---------------------------------------------------------------------------
def _warp_reference(x_flat, sxy, H, W):
    B, C, HW = x_flat.shape
    q = jnp.arange(HW)
    qx = (q % W).astype(jnp.float32)
    qy = (q // W).astype(jnp.float32)
    sx, sy = sxy[:, 0], sxy[:, 1]                                 # (B, HW)
    wx = jnp.maximum(0.0, 1.0 - jnp.abs(sx[:, None, :] - qx[None, :, None]))
    wy = jnp.maximum(0.0, 1.0 - jnp.abs(sy[:, None, :] - qy[None, :, None]))
    a = wx * wy                                                   # (B, HW_in, HW_out)
    return jnp.einsum('bcq,bqp->bcp', x_flat, a)


# ---------------------------------------------------------------------------
# "self.model": a deterministic linear classifier stand-in, plus cross-entropy.
# ---------------------------------------------------------------------------
def cross_entropy(logits, labels):
    logp = jax.nn.log_softmax(logits, axis=-1)
    return -jnp.mean(jnp.take_along_axis(logp, labels[:, None], axis=1))


def make_linear_model(key, in_features, num_classes):
    kw, _ = jax.random.split(key)
    w = jax.random.normal(kw, (in_features, num_classes), jnp.float32) * 0.02
    b = jnp.zeros((num_classes,), jnp.float32)

    def model(x):  # x: (B, C, H, W)
        return x.reshape(x.shape[0], -1) @ w + b

    return model


# ---------------------------------------------------------------------------
# PerspectiveWarp attack (whole attack loop is jitted; fori_loop over steps).
# ---------------------------------------------------------------------------
class PerspectiveWarp:
    def __init__(self, model, bound, num_iterations=20, step_size=None):
        self.model = model
        self.bound = float(bound)
        self.num_iterations = int(num_iterations)
        if step_size is not None:
            self.step_size = float(step_size)
        else:
            # Same formula as the PyTorch spec (undefined for num_iterations<=2).
            self.step_size = 2 * bound / (num_iterations - 2)
        self.identity = jnp.eye(3, dtype=jnp.float32)[None]
        self.mask = jnp.ones((3, 3), dtype=jnp.float32).at[2, 2].set(0.0)
        self._samplers = {}
        self._attack = jax.jit(self._attack_impl)

    def _get_sampler(self, H, W):
        if (H, W) not in self._samplers:
            self._samplers[(H, W)] = make_warp_sampler(H, W)
        return self._samplers[(H, W)]

    def _warp_images(self, inputs, warp):
        B, C, H, W = inputs.shape
        M = self.mask[None] * warp + self.identity
        minv = _inv3x3(M)                    # kornia inverts M internally
        sxy = _src_coords(minv, H, W)
        out = self._get_sampler(H, W)(inputs.reshape(B, C, H * W), sxy)
        return out.reshape(B, C, H, W)

    def _attack_impl(self, inputs, labels, key):
        B = labels.shape[0]
        # torch.rand(...) * bound  ->  uniform in [0, bound), as in the spec.
        warp0 = jax.random.uniform(key, (B, 3, 3), dtype=jnp.float32) * self.bound

        def cost_fn(w):
            logits = self.model(self._warp_images(inputs, w))
            return cross_entropy(logits, labels)

        grad_fn = jax.grad(cost_fn)

        def body(_, w):
            g = grad_fn(w)       # forward + backward both go through Pallas
            return jnp.clip(w + jnp.sign(g) * self.step_size,
                            -self.bound, self.bound)

        warp_final = jax.lax.fori_loop(0, self.num_iterations, body, warp0)
        return self._warp_images(inputs, warp_final)

    def __call__(self, inputs, labels, key):
        return self._attack(inputs, labels, key)


if __name__ == "__main__":
    B, C, H, W = 2, 4, 16, 16
    num_classes = 8

    key = jax.random.PRNGKey(0)
    k_inp, k_lab, k_model, k_warp = jax.random.split(key, 4)
    inputs = jax.random.normal(k_inp, (B, C, H, W), jnp.float32)
    labels = jax.random.randint(k_lab, (B,), 0, num_classes)

    model = make_linear_model(k_model, C * H * W, num_classes)
    attack = PerspectiveWarp(model, bound=0.05, num_iterations=5)

    # --- sanity: Pallas forward vs pure-JAX reference (bf16 matmul => loose tol)
    warp0 = jax.random.uniform(k_warp, (B, 3, 3), jnp.float32) * attack.bound
    minv0 = _inv3x3(attack.mask[None] * warp0 + attack.identity)
    sxy0 = _src_coords(minv0, H, W)
    x_flat = inputs.reshape(B, C, H * W)
    sampler = attack._get_sampler(H, W)

    pallas_out = jax.block_until_ready(sampler(x_flat, sxy0))
    ref_out = _warp_reference(x_flat, sxy0, H, W)
    assert jnp.allclose(pallas_out, ref_out, atol=5e-2, rtol=5e-2), \
        "forward mismatch vs reference"

    # --- sanity: Pallas custom-VJP backward vs autodiff of the reference
    gx_p = jax.grad(lambda xf: jnp.sum(sampler(xf, sxy0) ** 2))(x_flat)
    gx_r = jax.grad(lambda xf: jnp.sum(_warp_reference(xf, sxy0, H, W) ** 2))(x_flat)
    sc = jnp.max(jnp.abs(gx_r)) + 1e-6
    assert jnp.max(jnp.abs(gx_p - gx_r)) <= 0.1 * sc + 1e-2, "dL/dx mismatch"

    gs_p = jax.grad(lambda s: jnp.sum(sampler(x_flat, s) ** 2))(sxy0)
    gs_r = jax.grad(lambda s: jnp.sum(_warp_reference(x_flat, s, H, W) ** 2))(sxy0)
    sc = jnp.max(jnp.abs(gs_r)) + 1e-6
    assert jnp.max(jnp.abs(gs_p - gs_r)) <= 0.1 * sc + 1e-2, "dL/d(sx,sy) mismatch"

    # --- run the full (jitted) attack
    new_data = jax.block_until_ready(attack(inputs, labels, k_warp))
    assert new_data.shape == (B, C, H, W)
    assert new_data.dtype == jnp.float32
    assert bool(jnp.all(jnp.isfinite(new_data)))
    print("KERNEL_OK")
</pallas_src>

<mosaic_0001>
module attributes {stable_mosaic.version = 11 : i64} {
  func.func @_warp_fwd_kernel(%arg0: i32, %arg1: i32, %arg2: memref<1x2x128xf32, #tpu.memory_space<vmem>>, %arg3: memref<256x2xf32, #tpu.memory_space<vmem>>, %arg4: memref<1x4x256xf32, #tpu.memory_space<vmem>>, %arg5: memref<1x4x128xf32, #tpu.memory_space<vmem>>) attributes {dimension_semantics = [#tpu.dimension_semantics<parallel>, #tpu.dimension_semantics<parallel>], iteration_bounds = array<i64: 2, 2>, scalar_prefetch = 0 : i64, scratch_operands = 0 : i64, tpu.core_type = #tpu.core_type<tc>, window_params = [{transform_indices = @transform_0, window_bounds = array<i64: 1, 2, 128>}, {pipeline_mode = #tpu.pipeline_mode<synchronous>, transform_indices = @transform_1, window_bounds = array<i64: 256, 2>}, {transform_indices = @transform_2, window_bounds = array<i64: 1, 4, 256>}, {transform_indices = @transform_3, window_bounds = array<i64: 1, 4, 128>}]} {
    %c0 = arith.constant 0 : index
    %c0_0 = arith.constant 0 : index
    %c0_1 = arith.constant 0 : index
    %0 = vector.load %arg2[%c0, %c0_0, %c0_1] : memref<1x2x128xf32, #tpu.memory_space<vmem>>, vector<1x1x128xf32>
    %1 = vector.shape_cast %0 : vector<1x1x128xf32> to vector<1x128xf32>
    %c0_2 = arith.constant 0 : index
    %c1 = arith.constant 1 : index
    %c0_3 = arith.constant 0 : index
    %2 = vector.load %arg2[%c0_2, %c1, %c0_3] : memref<1x2x128xf32, #tpu.memory_space<vmem>>, vector<1x1x128xf32>
    %3 = vector.shape_cast %2 : vector<1x1x128xf32> to vector<1x128xf32>
    %c0_4 = arith.constant 0 : index
    %c0_5 = arith.constant 0 : index
    %4 = vector.load %arg3[%c0_4, %c0_5] : memref<256x2xf32, #tpu.memory_space<vmem>>, vector<256x1xf32>
    %c0_6 = arith.constant 0 : index
    %c1_7 = arith.constant 1 : index
    %5 = vector.load %arg3[%c0_6, %c1_7] : memref<256x2xf32, #tpu.memory_space<vmem>>, vector<256x1xf32>
    %6 = vector.broadcast %1 : vector<1x128xf32> to vector<256x128xf32>
    %7 = vector.broadcast %4 : vector<256x1xf32> to vector<256x128xf32>
    %8 = arith.subf %6, %7 : vector<256x128xf32>
    %9 = math.absf %8 : vector<256x128xf32>
    %cst = arith.constant 1.000000e+00 : f32
    %10 = vector.broadcast %cst : f32 to vector<256x128xf32>
    %11 = arith.subf %10, %9 : vector<256x128xf32>
    %cst_8 = arith.constant 0.000000e+00 : f32
    %12 = vector.broadcast %cst_8 : f32 to vector<256x128xf32>
    %13 = arith.maximumf %12, %11 : vector<256x128xf32>
    %14 = vector.broadcast %3 : vector<1x128xf32> to vector<256x128xf32>
    %15 = vector.broadcast %5 : vector<256x1xf32> to vector<256x128xf32>
    %16 = arith.subf %14, %15 : vector<256x128xf32>
    %17 = math.absf %16 : vector<256x128xf32>
    %cst_9 = arith.constant 1.000000e+00 : f32
    %18 = vector.broadcast %cst_9 : f32 to vector<256x128xf32>
    %19 = arith.subf %18, %17 : vector<256x128xf32>
    %cst_10 = arith.constant 0.000000e+00 : f32
    %20 = vector.broadcast %cst_10 : f32 to vector<256x128xf32>
    %21 = arith.maximumf %20, %19 : vector<256x128xf32>
    %22 = arith.mulf %13, %21 : vector<256x128xf32>
    %23 = arith.truncf %22 : vector<256x128xf32> to vector<256x128xbf16>
    %c0_11 = arith.constant 0 : index
    %c0_12 = arith.constant 0 : index
    %c0_13 = arith.constant 0 : index
    %24 = vector.load %arg4[%c0_11, %c0_12, %c0_13] : memref<1x4x256xf32, #tpu.memory_space<vmem>>, vector<1x4x256xf32>
    %25 = vector.shape_cast %24 : vector<1x4x256xf32> to vector<4x256xf32>
    %26 = arith.truncf %25 : vector<4x256xf32> to vector<4x256xbf16>
    %cst_14 = arith.constant dense<0.000000e+00> : vector<4x128xf32>
    %27 = tpu.matmul %26, %23, %cst_14 {dimension_numbers = #tpu.dot_dimension_numbers<[1], [0], [0], [1], [0, 0, 1, 1], [], []>} : vector<4x256xbf16>, vector<256x128xbf16>, vector<4x128xf32> -> vector<4x128xf32>
    %c0_15 = arith.constant 0 : index
    %c0_16 = arith.constant 0 : index
    %c0_17 = arith.constant 0 : index
    %28 = vector.load %arg5[%c0_15, %c0_16, %c0_17] : memref<1x4x128xf32, #tpu.memory_space<vmem>>, vector<1x4x128xf32>
    %29 = vector.shape_cast %28 : vector<1x4x128xf32> to vector<4x128xf32>
    %30 = vector.shape_cast %27 : vector<4x128xf32> to vector<1x4x128xf32>
    tpu.vector_store %arg5[%c0_15, %c0_16, %c0_17], %30 {strides = array<i32>} : memref<1x4x128xf32, #tpu.memory_space<vmem>>, vector<1x4x128xf32>,
    return
  }
  func.func @transform_0(%arg0: i32, %arg1: i32) -> (i32, i32, i32) {
    %c0_i32 = arith.constant 0 : i32
    %c0_i32_0 = arith.constant 0 : i32
    return %arg0, %c0_i32, %arg1 : i32, i32, i32
  }
  func.func @transform_1(%arg0: i32, %arg1: i32) -> (i32, i32) {
    %c0_i32 = arith.constant 0 : i32
    %c0_i32_0 = arith.constant 0 : i32
    %c0_i32_1 = arith.constant 0 : i32
    return %c0_i32, %c0_i32_0 : i32, i32
  }
  func.func @transform_2(%arg0: i32, %arg1: i32) -> (i32, i32, i32) {
    %c0_i32 = arith.constant 0 : i32
    %c0_i32_0 = arith.constant 0 : i32
    %c0_i32_1 = arith.constant 0 : i32
    return %arg0, %c0_i32, %c0_i32_0 : i32, i32, i32
  }
  func.func @transform_3(%arg0: i32, %arg1: i32) -> (i32, i32, i32) {
    %c0_i32 = arith.constant 0 : i32
    %c0_i32_0 = arith.constant 0 : i32
    return %arg0, %c0_i32, %arg1 : i32, i32, i32
  }
}

</mosaic_0001>

<bundles_post_ra>
// kernel: tpu_custom_call.1
= control target key start
LH: loop header
LB: loop body
LE: loop exit
PB: predicated region body
PF: predicated region fallthrough
CT: control target
= control target key end

     0   :  { %8 = vsyncpa [#allocation3], 0  ;;  %s1684_s0 = inlined_call_operand.vmem [shape: f32[2,2,256], index: 0, kind: input, shape index: {}]   ;;  %s1685_s1 = inlined_call_operand.vmem [shape: f32[256,2], index: 1, kind: input, shape index: {}]   ;;  %s1686_s2 = inlined_call_operand.vmem [shape: f32[2,4,256], index: 2, kind: input, shape index: {}]   ;;  %s1687_s3 = inlined_call_operand.hbm [shape: f32[2,4,256], index: 3, kind: output, shape index: {}]  }
   0x1   :  { %10 = vsyncpa [#allocation3 + $0x1], 0  ;;  %s1266_s12 = smov 0   ;;  %s1268_s13 = smov 0  }
   0x2   :  { %s1270_s14 = smov 0   ;;  %s1272_s15 = smov 0  }
   0x3   :  { %s1274_s16 = smov 0   ;;  %s1276_s17 = smov 0  }
   0x4   :  { %s1278_s18 = smov 0   ;;  %s1280_s19 = smov 0  }
   0x5 LB: > { %s1002_s20 = sadd.s32 4294967295, %s1241_s19   ;;  %s1003_s21 = sadd.s32 4294967294, %s1241_s19   ;;  %s1241_s19 = sphi %s1280_s19, %s16_s19   ;;  %s1237_s18 = sphi %s1278_s18, %s1696_s18   ;;  %s1233_s17 = sphi %s1276_s17, %s1695_s17   ;;  %s1229_s16 = sphi %s1274_s16, %s1694_s16   ;;  %s1225_s15 = sphi %s1272_s15, %s1693_s15   ;;  %s1221_s14 = sphi %s1270_s14, %s1692_s14   ;;  %s1217_s13 = sphi %s1268_s13, %s1691_s13   ;;  %s1213_s12 = sphi %s1266_s12, %s1690_s12  }
   0x6   : > { %s25_s22 = sadd.s32 1, %s1233_s17  ;;  %s28_s23 = sadd.s32 1, %s1237_s18 }
   0x7   : > { %p26_p0 = scmp.ge.s32.totalorder %s25_s22, 2  ;;  %p122_p1 = scmp.ne.s32.totalorder %s1221_s14, %s1217_s13 }
   0x8   : > { %p123_p2 = scmp.eq.s32.totalorder %s1002_s20, 3  ;;  %p128_p5 = scmp.ne.s32.totalorder %s1217_s13, %s1213_s12 }
   0x9   : > { %s1698_s22 = smov (%p26_p0, %s25_s22), 0  ;;  %s1700_s23 = smov (!%p26_p0, %s28_s23), %s1237_s18 }
   0xa   : > { %s108_s24 = ssub.s32 %s1233_s17, %s1698_s22  ;;  %p1317_p3 = por %p123_p2, %p122_p1 }
   0xb   : > { %p30_p4 = scmp.ge.s32.totalorder %s1700_s23, 2  ;;  %p129_p6 = scmp.eq.s32.totalorder %s1003_s21, 3 }
   0xc   : > { %p1006_p7 = scmp.ge.s32.totalorder %s1241_s19, 1  ;;  %p169_p9 = scmp.lt.s32.totalorder %s1241_s19, 5 }
   0xd   : > { %s1702_s23 = smov (%p30_p4, %s1700_s23), 0  ;;  %p1326_p8 = por %p129_p6, %p128_p5 }
   0xe   : > { %s107_s27 = ssub.s32 %s1237_s18, %s1702_s23  ;;  %s112_s28 = sadd.s32 1, %s1221_s14 }
   0xf   : > { %s109_s29 = sor.u32 %s108_s24, %s107_s27  ;;  %p170_p10 = pnand %p1006_p7, %p169_p9 }
  0x10   : > { %p110_p11 = scmp.eq.s32.totalorder %s109_s29, 0  ;;  %p201_p12 = scmp.lt.s32.totalorder (!%p170_p10), %s1229_s16, 1 }
  0x11   : > { %173 = sbr.rel (%p170_p10) target bundleno = 556 (0x22c), region = 32  ;;  %p203_p13 = scmp.lt.s32.totalorder (!%p170_p10), %s1225_s15, 1 }
  0x12   : > { %s1335_s30 = scalar_select %p110_p11, %s1221_s14, %s112_s28  }
  0x13   : > { %s1015_s20 = sshll.u32 (!%p170_p10), %s1229_s16, 1 }
  0x14   : > { %s908_s21 = sadd.s32 (!%p170_p10), %s1225_s15, %s1015_s20 }
  0x16   : > { %v247_v0 = vld [vmem:[%s1685_s1 + $0xf0] sm:$0xff]  ;;  %v1243_v1 = vmov 1   ;;  %v1244_v2 = vmov 0   ;;  %v248_v3 = vld [vmem:[%s1685_s1 + $0xf8] sm:$0xff]  ;;  %v246_v6 = vld [vmem:[%s1685_s1 + $0xe8] sm:$0xff]  ;;  %s1447_s24 = scalar_select %p201_p12, %s1229_s16, 1 }
  0x17   : > { %1116 = vset.pattern.permute.xlu1 %v1243_v1  ;;  %1115 = vset.pattern.permute.xlu0 %v1244_v2  ;;  %v231_v4 = vld [vmem:[%s1685_s1 + $0x70] sm:$0xff]  ;;  %v232_v5 = vld [vmem:[%s1685_s1 + $0x78] sm:$0xff]  ;;  %v229_v7 = vld [vmem:[%s1685_s1 + $0x60] sm:$0xff]  ;;  %s204_s27 = scalar_select %p203_p13, %s1225_s15, 1 }
  0x18   : > { %666 = vperm.xlu1 %1116, %v247_v0   ;;  %405 = vperm.xlu0 %1115, %v247_v0   ;;  %v245_v8 = vld [vmem:[%s1685_s1 + $0xe0] sm:$0xff]  ;;  %v244_v9 = vld [vmem:[%s1685_s1 + $0xd8] sm:$0xff]  ;;  %v227_v10 = vld [vmem:[%s1685_s1 + $0x50] sm:$0xff]  ;;  %s1008_s28 = sshll.u32 %s1447_s24, 1  ;;  %s1019_s7 = sshll.u32 %s1447_s24, 3 }
  0x19   : > { %v242_v11 = vld [vmem:[%s1685_s1 + $0xc8] sm:$0xff]  ;;  %v225_v12 = vld [vmem:[%s1685_s1 + $0x40] sm:$0xff]  ;;  %v240_v14 = vld [vmem:[%s1685_s1 + $0xb8] sm:$0xff]  ;;  %s206_s5 = sadd.s32 %s1008_s28, %s204_s27  ;;  %s213_s10 = scalar_lea.vmem %s1686_s2, %s1019_s7 }
  0x1a   : > { %v230_v13 = vld [vmem:[%s1685_s1 + $0x68] sm:$0xff]  ;;  %v223_v15 = vld [vmem:[%s1685_s1 + $0x30] sm:$0xff]  ;;  %v221_v18 = vld [vmem:[%s1685_s1 + $0x20] sm:$0xff]  ;;  %s1009_s6 = sshll.u32 %s206_s5, 1  ;;  %s198_s24 = sand.u32 1, %s1217_s13  }
  0x1b   : > { %v243_v16 = vld [vmem:[%s1685_s1 + $0xd0] sm:$0xff]  ;;  %v1393_v17 = vld [vmem:[%s1685_s1 + $0xa8] sm:$0xff]  ;;  %v1404_v19 = vld [vmem:[%s1685_s1 + $0x98] sm:$0xff]  ;;  %s208_s9 = scalar_lea.vmem %s1684_s0, %s1009_s6  ;;  %s1007_s11 = sshll.u32 %s198_s24, 2 }
  0x1c   : > { %670 = vperm.xlu1 %1116, %v248_v3   ;;  %410 = vperm.xlu0 %1115, %v248_v3   ;;  %v219_v20 = vld [vmem:[%s1685_s1 + $0x10] sm:$0xff]  ;;  %v228_v21 = vld [vmem:[%s1685_s1 + $0x58] sm:$0xff]  ;;  %v1417_v22 = vld [vmem:[%s1685_s1 + $0x88] sm:$0xff]  ;;  %s1016_s27 = sshll.u32 %s908_s21, 6  ;;  %s200_s28 = scalar_lea.vmem [#allocation2], %s1007_s11 }
  0x1d   : > { %v217_v23 = vld [vmem:[%s1685_s1] sm:$0xff]  ;;  %v226_v25 = vld [vmem:[%s1685_s1 + $0x48] sm:$0xff]  ;;  %v239_v26 = vld [vmem:[%s1685_s1 + $0xb0] sm:$0xff]  ;;  %s912_s29 = sshll.u32 %s200_s28, 4  ;;  %s1632_s6 = scalar_lea.hbm %s1687_s3, %s1016_s27  ;;  %s1634_s29 = int_to_ptr.vmem [resolvable:$true] %s912_s29 }
  0x1e   : > { %v241_v24 = vld [vmem:[%s1685_s1 + $0xc0] sm:$0xff]  ;;  %v224_v27 = vld [vmem:[%s1685_s1 + $0x38] sm:$0xff]  ;;  %v222_v37 = vld [vmem:[%s1685_s1 + $0x28] sm:$0xff]  ;;  %s897_s15 = scalar_lea.sflag [#allocation3], %s198_s24  ;;  %s1149_s16 = scalar_lea.vmem %s1634_s29, 64 }
  0x1f   : > { %v237_v28 = vld [vmem:[%s1685_s1 + $0xa0] sm:$0xff]  ;;  %v235_v55 = vld [vmem:[%s1685_s1 + $0x90] sm:$0xff]  ;;  %v220_v3 = vld [vmem:[%s1685_s1 + $0x18] sm:$0xff]  ;;  %p1150_p0 = scmp.ne.s32.totalorder %s1634_s29, %s1149_s16  ;;  %s1245_s7 = smov [#allocation2]  }
  0x20   : > { %1117 = vset.pattern.permute.xlu1 %v1244_v2  ;;  %325 = vperm.xlu0 %1115, %v231_v4   ;;  %v1460_v29 = vld [vmem:[%s208_s9 + $0x1] ss:$0 sm:$0xff]  ;;  %v1462_v30 = vld [vmem:[%s208_s9] ss:$0 sm:$0xff]  ;;  %s1153_s8 = sshll.u32 %s1245_s7, 4  ;;  %s1154_s8 = int_to_ptr.vmem [resolvable:$false] %s1153_s8 }
  0x21   : > { %330 = vperm.xlu1 %1117, %v232_v5   ;;  %p1151_p1 = pnand %p1150_p0, %p1317_p3  ;;  %s1155_s9 = scalar_lea.vmem %s1154_s8, 128 }
  0x22   : > { %p1156_p4 = scmp.lt.s32.totalorder %s1634_s29, %s1154_s8  ;;  %p1157_p5 = scmp.lt.s32.totalorder %s1155_s9, %s1149_s16 }
  0x23   : > { %p1152_p2 = pneg %p1151_p1 }
  0x24   : > { %400 = vperm.xlu0 %1115, %v246_v6   ;;  %p1158_p6 = por %p1157_p5, %p1156_p4 }
  0x25   : > { %1118 = vset.pattern.permute.xlu1 %v1243_v1 }
  0x26   : > { %606 = vperm.xlu1 %1118, %v232_v5   ;;  %p1159_p7 = pnand %p1158_p6, %p1152_p2 }
  0x28   : > { %315 = vperm.xlu0 %1115, %v229_v7  }
  0x2a   : > { %1119 = vset.pattern.permute.xlu1 %v1244_v2 }
  0x2b   : > { %395 = vperm.xlu1 %1119, %v245_v8  }
  0x2c   : > { %390 = vperm.xlu0 %1115, %v244_v9  }
  0x2f   : > { %1120 = vset.pattern.permute.xlu1 %v1243_v1 }
  0x30   : > { %658 = vperm.xlu1 %1120, %v245_v8   ;;  %305 = vperm.xlu0 %1115, %v227_v10  }
  0x34   : > { %662 = vperm.xlu1 %1120, %v246_v6   ;;  %380 = vperm.xlu0 %1115, %v242_v11  }
  0x38   : > { %1121 = vset.pattern.permute.xlu1 %v1244_v2  ;;  %295 = vperm.xlu0 %1115, %v225_v12  }
  0x39   : > { %320 = vperm.xlu1 %1121, %v230_v13  }
  0x3c   : > { %370 = vperm.xlu0 %1115, %v240_v14  }
  0x3d   : > { %1122 = vset.pattern.permute.xlu1 %v1243_v1 }
  0x3e   : > { %598 = vperm.xlu1 %1122, %v230_v13  }
  0x40   : > { %285 = vperm.xlu0 %1115, %v223_v15  }
  0x42   : > { %1123 = vset.pattern.permute.xlu1 %v1244_v2 }
  0x43   : > { %385 = vperm.xlu1 %1123, %v243_v16  }
  0x44   : > { %360 = vperm.xlu0 %1115, %v1393_v17  }
  0x47   : > { %1124 = vset.pattern.permute.xlu1 %v1243_v1 }
  0x48   : > { %650 = vperm.xlu1 %1124, %v243_v16   ;;  %275 = vperm.xlu0 %1115, %v221_v18  }
  0x4c   : > { %654 = vperm.xlu1 %1124, %v244_v9   ;;  %350 = vperm.xlu0 %1115, %v1404_v19   ;;  %v233_v9 = vld [vmem:[%s1685_s1 + $0x80] sm:$0xff] }
  0x50   : > { %1125 = vset.pattern.permute.xlu1 %v1244_v2  ;;  %265 = vperm.xlu0 %1115, %v219_v20  }
  0x51   : > { %310 = vperm.xlu1 %1125, %v228_v21  }
  0x54   : > { %340 = vperm.xlu0 %1115, %v1417_v22  }
  0x55   : > { %1126 = vset.pattern.permute.xlu1 %v1243_v1 }
  0x56   : > { %590 = vperm.xlu1 %1126, %v228_v21  }
  0x58   : > { %255 = vperm.xlu0 %1115, %v217_v23  }
  0x5a   : > { %1127 = vset.pattern.permute.xlu1 %v1244_v2 }
  0x5b   : > { %375 = vperm.xlu1 %1127, %v241_v24  }
  0x5c   : > { %1145 = vset.pattern.permute.xlu0 %v1243_v1 }
  0x5d   : > { %602 = vperm.xlu0 %1145, %v231_v4  }
  0x5f   : > { %1128 = vset.pattern.permute.xlu1 %v1243_v1 }
  0x60   : > { %642 = vperm.xlu1 %1128, %v241_v24  }
  0x61   : > { %594 = vperm.xlu0 %1145, %v229_v7  }
  0x64   : > { %646 = vperm.xlu1 %1128, %v242_v11  }
  0x65   : > { %586 = vperm.xlu0 %1145, %v227_v10  }
  0x68   : > { %1129 = vset.pattern.permute.xlu1 %v1244_v2 }
  0x69   : > { %300 = vperm.xlu1 %1129, %v226_v25   ;;  %578 = vperm.xlu0 %1145, %v225_v12  }
  0x6d   : > { %1130 = vset.pattern.permute.xlu1 %v1243_v1  ;;  %570 = vperm.xlu0 %1145, %v223_v15  }
  0x6e   : > { %582 = vperm.xlu1 %1130, %v226_v25  }
  0x71   : > { %562 = vperm.xlu0 %1145, %v221_v18  }
  0x72   : > { %1131 = vset.pattern.permute.xlu1 %v1244_v2 }
  0x73   : > { %365 = vperm.xlu1 %1131, %v239_v26  }
  0x75   : > { %554 = vperm.xlu0 %1145, %v219_v20  }
  0x77   : > { %1132 = vset.pattern.permute.xlu1 %v1243_v1 }
  0x78   : > { %634 = vperm.xlu1 %1132, %v239_v26  }
  0x79   : > { %546 = vperm.xlu0 %1145, %v217_v23  }
  0x7c   : > { %638 = vperm.xlu1 %1132, %v240_v14  }
  0x80   : > { %1133 = vset.pattern.permute.xlu1 %v1244_v2 }
  0x81   : > { %290 = vperm.xlu1 %1133, %v224_v27  }
  0x85   : > { %1134 = vset.pattern.permute.xlu1 %v1243_v1 }
  0x86   : > { %574 = vperm.xlu1 %1134, %v224_v27  }
  0x8a   : > { %1135 = vset.pattern.permute.xlu1 %v1244_v2 }
  0x8b   : > { %355 = vperm.xlu1 %1135, %v237_v28  }
  0x8f   : > { %1136 = vset.pattern.permute.xlu1 %v1243_v1 }
  0x90   : > { %626 = vperm.xlu1 %1136, %v237_v28  }
  0x93   : > { %v667_v31 = vpop.permute.xlu1 %666  ;;  %v406_v32 = vpop.permute.xlu0 %405 }
  0x94   : > { %v703_v33 = vsub.f32 %v1460_v29, %v667_v31  ;;  %v443_v34 = vsub.f32 %v1462_v30, %v406_v32  ;;  %630 = vperm.xlu1 %1136, %v1393_v17   ;;  %v218_v17 = vld [vmem:[%s1685_s1 + $0x8] sm:$0xff] }
  0x96   : > { %v735_v35 = vand.u32 2147483647, %v703_v33  ;;  %v475_v36 = vand.u32 2147483647, %v443_v34 }
  0x97   : > { %v671_v38 = vpop.permute.xlu1 %670  ;;  %v411_v39 = vpop.permute.xlu0 %410 }
  0x98   : > { %v767_v40 = vsub.f32 1.0, %v735_v35  ;;  %v507_v41 = vsub.f32 1.0, %v475_v36  ;;  %v704_v42 = vsub.f32 %v1460_v29, %v671_v38  ;;  %v444_v43 = vsub.f32 %v1462_v30, %v411_v39  ;;  %1137 = vset.pattern.permute.xlu1 %v1244_v2 }
  0x99   : > { %280 = vperm.xlu1 %1137, %v222_v37  }
  0x9a   : > { %v736_v44 = vand.u32 2147483647, %v704_v42  ;;  %v476_v45 = vand.u32 2147483647, %v444_v43  ;;  %v799_v47 = vmax.f32 %v767_v40, 0.0  ;;  %v539_v48 = vmax.f32 %v507_v41, 0.0 }
  0x9b   : > { %v326_v46 = vpop.permute.xlu0 %325 }
  0x9c   : > { %v768_v49 = vsub.f32 1.0, %v736_v44  ;;  %v508_v50 = vsub.f32 1.0, %v476_v45  ;;  %v331_v51 = vpop.permute.xlu1 %330  ;;  %v831_v56 = vmul.f32 %v799_v47, %v539_v48  ;;  %v427_v16 = vsub.f32 %v1462_v30, %v326_v46 }
  0x9d   : > { %1138 = vset.pattern.permute.xlu1 %v1243_v1  ;;  %v428_v18 = vsub.f32 %v1462_v30, %v331_v51 }
  0x9e   : > { %v800_v52 = vmax.f32 %v768_v49, 0.0  ;;  %v540_v53 = vmax.f32 %v508_v50, 0.0  ;;  %566 = vperm.xlu1 %1138, %v222_v37   ;;  %v459_v24 = vand.u32 2147483647, %v427_v16 }
  0x9f   : > { %v401_v54 = vpop.permute.xlu0 %400  ;;  %v460_v27 = vand.u32 2147483647, %v428_v18 }
  0xa0   : > { %v832_v57 = vmul.f32 %v800_v52, %v540_v53  ;;  %v442_v23 = vsub.f32 %v1462_v30, %v401_v54  ;;  %v491_v37 = vsub.f32 1.0, %v459_v24 }
  0xa1   : > { %v607_v58 = vpop.permute.xlu1 %606  ;;  %v492_v40 = vsub.f32 1.0, %v460_v27 }
  0xa2   : > { %1139 = vset.pattern.permute.xlu1 %v1244_v2  ;;  %v848_v59 = vpack.c.bf16 %v832_v57, %v831_v56  ;;  %v1541_v50 = vmax.f32 %v491_v37, 0.0 }
  0xa3   : > { %345 = vperm.xlu1 %1139, %v235_v55   ;;  %v316_v60 = vpop.permute.xlu0 %315  ;;  %v524_v53 = vmax.f32 %v492_v40, 0.0 }
  0xa4   : > { %1020 = vmatprep.subr.bf16.mxu0 %v848_v59 }
  0xa6   : > { %v396_v61 = vpop.permute.xlu1 %395 }
  0xa7   : > { %1140 = vset.pattern.permute.xlu1 %v1243_v1  ;;  %v391_v62 = vpop.permute.xlu0 %390  ;;  %v441_v32 = vsub.f32 %v1462_v30, %v396_v61 }
  0xa8   : > { %618 = vperm.xlu1 %1140, %v235_v55   ;;  %v440_v33 = vsub.f32 %v1462_v30, %v391_v62 }
  0xa9   : > { %v473_v44 = vand.u32 2147483647, %v441_v32 }
  0xaa   : > { %v472_v45 = vand.u32 2147483647, %v440_v33 }
  0xab   : > { %v659_v63 = vpop.permute.xlu1 %658  ;;  %v306_v0 = vpop.permute.xlu0 %305  ;;  %v505_v59 = vsub.f32 1.0, %v473_v44 }
  0xac   : > { %622 = vperm.xlu1 %1140, %v1404_v19   ;;  %v688_v19 = vsub.f32 %v1460_v29, %v607_v58  ;;  %v701_v25 = vsub.f32 %v1460_v29, %v659_v63  ;;  %v423_v36 = vsub.f32 %v1462_v30, %v306_v0  ;;  %v1550_v58 = vld [vmem:[%s213_s10] sm:$0xff] }
  0xad   : > { %v851_v62 = vcombine.high %v1550_v58, %v1550_v58 }
  0xae   : > { %v720_v28 = vand.u32 2147483647, %v688_v19  ;;  %v733_v38 = vand.u32 2147483647, %v701_v25  ;;  %v455_v48 = vand.u32 2147483647, %v423_v36 }
  0xaf   : > { %v663_v4 = vpop.permute.xlu1 %662  ;;  %v1483_v5 = vpop.permute.xlu0 %380 }
  0xb0   : > { %1141 = vset.pattern.permute.xlu1 %v1244_v2  ;;  %v702_v26 = vsub.f32 %v1460_v29, %v663_v4  ;;  %v752_v41 = vsub.f32 1.0, %v720_v28  ;;  %v438_v42 = vsub.f32 %v1462_v30, %v1483_v5  ;;  %v765_v51 = vsub.f32 1.0, %v733_v38 }
  0xb1   : > { %270 = vperm.xlu1 %1141, %v220_v3  }
  0xb2   : > { %v734_v39 = vand.u32 2147483647, %v702_v26  ;;  %v784_v54 = vmax.f32 %v752_v41, 0.0  ;;  %v470_v55 = vand.u32 2147483647, %v438_v42  ;;  %v797_v5 = vmax.f32 %v765_v51, 0.0 }
  0xb3   : > { %v1486_v6 = vpop.permute.xlu0 %295 }
  0xb4   : > { %v1488_v7 = vpop.permute.xlu1 %320  ;;  %v766_v52 = vsub.f32 1.0, %v734_v39  ;;  %v1562_v19 = vmul.f32 %v784_v54, %v524_v53 }
  0xb5   : > { %1142 = vset.pattern.permute.xlu1 %v1243_v1  ;;  %v426_v56 = vsub.f32 %v1462_v30, %v1488_v7 }
  0xb6   : > { %558 = vperm.xlu1 %1142, %v220_v3   ;;  %v487_v3 = vsub.f32 1.0, %v455_v48 }
  0xb7   : > { %v1491_v8 = vpop.permute.xlu0 %370  ;;  %v458_v18 = vand.u32 2147483647, %v426_v56 }
  0xb8   : > { %v1565_v27 = vmax.f32 %v487_v3, 0.0 }
  0xb9   : > { %v1496_v10 = vpop.permute.xlu1 %598  ;;  %v490_v37 = vsub.f32 1.0, %v458_v18 }
  0xba   : > { %1143 = vset.pattern.permute.xlu1 %v1244_v2 }
  0xbb   : > { %335 = vperm.xlu1 %1143, %v233_v9   ;;  %v1499_v11 = vpop.permute.xlu0 %285  ;;  %v522_v54 = vmax.f32 %v490_v37, 0.0 }
  0xbe   : > { %v1501_v12 = vpop.permute.xlu1 %385 }
  0xbf   : > { %1144 = vset.pattern.permute.xlu1 %v1243_v1  ;;  %v1504_v13 = vpop.permute.xlu0 %360  ;;  %v439_v7 = vsub.f32 %v1462_v30, %v1501_v12  ;;  %v421_v12 = vsub.f32 %v1462_v30, %v1486_v6 }
  0xc0   : > { %610 = vperm.xlu1 %1144, %v233_v9   ;;  %v798_v9 = vmax.f32 %v766_v52, 0.0 }
  0xc3   : > { %v1506_v14 = vpop.permute.xlu1 %650  ;;  %v1508_v15 = vpop.permute.xlu0 %275 }
  0xc4   : > { %614 = vperm.xlu1 %1144, %v1417_v22   ;;  %v425_v22 = vsub.f32 %v1462_v30, %v316_v60  ;;  %v504_v60 = vsub.f32 1.0, %v472_v45 }
  0xc6   : > { %v457_v35 = vand.u32 2147483647, %v425_v22  ;;  %v536_v22 = vmax.f32 %v504_v60, 0.0 }
  0xc7   : > { %v1517_v20 = vpop.permute.xlu1 %654  ;;  %v1519_v21 = vpop.permute.xlu0 %350 }
  0xc8   : > { %1146 = vset.pattern.permute.xlu1 %v1244_v2  ;;  %v474_v2 = vand.u32 2147483647, %v442_v23  ;;  %v489_v47 = vsub.f32 1.0, %v457_v35  ;;  %v700_v61 = vsub.f32 %v1460_v29, %v1517_v20  ;;  %v854_v20 = vpack.c.bf16 %v851_v62, %v851_v62 }
  0xc9   : > { %260 = vperm.xlu1 %1146, %v218_v17   ;;  %v537_v23 = vmax.f32 %v505_v59, 0.0 }
  0xca   : > { %v506_v46 = vsub.f32 1.0, %v474_v2  ;;  %v1556_v0 = vmax.f32 %v489_v47, 0.0  ;;  %v732_v24 = vand.u32 2147483647, %v700_v61  ;;  %887 = vmatprep.mubr.bf16.mxu0 %v854_v20  ;;  %v471_v2 = vand.u32 2147483647, %v439_v7 }
  0xcb   : > { %v1526_v31 = vpop.permute.xlu0 %265  ;;  %v829_v32 = vmul.f32 %v797_v5, %v537_v23 }
  0xcc   : > { %v1530_v34 = vpop.permute.xlu1 %310  ;;  %v538_v63 = vmax.f32 %v506_v46, 0.0  ;;  %v764_v41 = vsub.f32 1.0, %v732_v24  ;;  %v453_v46 = vand.u32 2147483647, %v421_v12 }
  0xcd   : > { %1147 = vset.pattern.permute.xlu1 %v1243_v1  ;;  %v686_v1 = vsub.f32 %v1460_v29, %v1496_v10  ;;  %v699_v10 = vsub.f32 %v1460_v29, %v1506_v14  ;;  %v424_v38 = vsub.f32 %v1462_v30, %v1530_v34 }
  0xce   : > { %550 = vperm.xlu1 %1147, %v218_v17   ;;  %v502_v17 = vsub.f32 1.0, %v470_v55  ;;  %v830_v33 = vmul.f32 %v798_v9, %v538_v63  ;;  %v796_v60 = vmax.f32 %v764_v41, 0.0 }
  0xcf   : > { %v1536_v43 = vpop.permute.xlu0 %340  ;;  %v718_v4 = vand.u32 2147483647, %v686_v1  ;;  %v731_v35 = vand.u32 2147483647, %v699_v10  ;;  %v456_v34 = vand.u32 2147483647, %v424_v38 }
  0xd0   : > { %v534_v36 = vmax.f32 %v502_v17, 0.0  ;;  %v847_v53 = vpack.c.bf16 %v830_v33, %v829_v32  ;;  %v485_v38 = vsub.f32 1.0, %v453_v46 }
  0xd1   : > { %v591_v49 = vpop.permute.xlu1 %590  ;;  %v750_v28 = vsub.f32 1.0, %v718_v4  ;;  %v763_v51 = vsub.f32 1.0, %v731_v35  ;;  %v488_v20 = vsub.f32 1.0, %v456_v34 }
  0xd2   : > { %v684_v25 = vsub.f32 %v1460_v29, %v591_v49  ;;  %v503_v49 = vsub.f32 1.0, %v471_v2 }
  0xd3   : > { %v1548_v57 = vpop.permute.xlu0 %255  ;;  %v782_v47 = vmax.f32 %v750_v28, 0.0 }
  0xd4   : > { %v716_v42 = vand.u32 2147483647, %v684_v25  ;;  %v535_v10 = vmax.f32 %v503_v49, 0.0 }
  0xd5   : > { %v814_v4 = vmul.f32 %v782_v47, %v522_v54  ;;  %v517_v54 = vmax.f32 %v485_v38, 0.0 }
  0xd6   : > { %v376_v16 = vpop.permute.xlu1 %375  ;;  %v748_v61 = vsub.f32 1.0, %v716_v42 }
  0xd7   : > { %v437_v44 = vsub.f32 %v1462_v30, %v376_v16  ;;  %v795_v16 = vmax.f32 %v763_v51, 0.0 }
  0xd8   : > { %v603_v26 = vpop.permute.xlu0 %602  ;;  %v780_v12 = vmax.f32 %v748_v61, 0.0 }
  0xd9   : > { %v687_v14 = vsub.f32 %v1460_v29, %v603_v26  ;;  %v469_v62 = vand.u32 2147483647, %v437_v44  ;;  %v828_v26 = vmul.f32 %v796_v60, %v536_v22 }
  0xdb   : > { %v719_v39 = vand.u32 2147483647, %v687_v14  ;;  %v643_v40 = vpop.permute.xlu1 %642  ;;  %v501_v28 = vsub.f32 1.0, %v469_v62 }
  0xdc   : > { %v697_v6 = vsub.f32 %v1460_v29, %v643_v40  ;;  %v595_v45 = vpop.permute.xlu0 %594 }
  0xdd   : > { %v751_v48 = vsub.f32 1.0, %v719_v39  ;;  %v685_v1 = vsub.f32 %v1460_v29, %v595_v45  ;;  %v827_v39 = vmul.f32 %v795_v16, %v535_v10 }
  0xde   : > { %v729_v52 = vand.u32 2147483647, %v697_v6  ;;  %v533_v6 = vmax.f32 %v501_v28, 0.0 }
  0xdf   : > { %v783_v55 = vmax.f32 %v751_v48, 0.0  ;;  %v717_v56 = vand.u32 2147483647, %v685_v1  ;;  %v647_v59 = vpop.permute.xlu1 %646  ;;  %v846_v48 = vpack.c.bf16 %v828_v26, %v827_v39 }
  0xe0   : > { %v698_v63 = vsub.f32 %v1460_v29, %v647_v59  ;;  %v587_v3 = vpop.permute.xlu0 %586  ;;  %v761_v17 = vsub.f32 1.0, %v729_v52 }
  0xe1   : > { %v749_v5 = vsub.f32 1.0, %v717_v56  ;;  %v683_v9 = vsub.f32 %v1460_v29, %v587_v3  ;;  %v815_v7 = vmul.f32 %v783_v55, %v1541_v50 }
  0xe2   : > { %v730_v18 = vand.u32 2147483647, %v698_v63  ;;  %v793_v40 = vmax.f32 %v761_v17, 0.0  ;;  %v436_v63 = vsub.f32 %v1462_v30, %v1491_v8  ;;  %v419_v8 = vsub.f32 %v1462_v30, %v1499_v11 }
  0xe3   : > { %v781_v23 = vmax.f32 %v749_v5, 0.0  ;;  %v715_v24 = vand.u32 2147483647, %v683_v9  ;;  %v840_v25 = vpack.c.bf16 %v1562_v19, %v815_v7  ;;  %v520_v19 = vmax.f32 %v488_v20, 0.0 }
  0xe4   : > { %v762_v14 = vsub.f32 1.0, %v730_v18  ;;  %v301_v32 = vpop.permute.xlu1 %300  ;;  %v579_v33 = vpop.permute.xlu0 %578  ;;  %v825_v52 = vmul.f32 %v793_v40, %v533_v6  ;;  %v468_v10 = vand.u32 2147483647, %v436_v63 }
  0xe5   : > { %v813_v2 = vmul.f32 %v781_v23, %v1556_v0  ;;  %v747_v35 = vsub.f32 1.0, %v715_v24  ;;  %v422_v50 = vsub.f32 %v1462_v30, %v301_v32  ;;  %v681_v37 = vsub.f32 %v1460_v29, %v579_v33  ;;  %1021 = vmatpush3.bf16.msra.mxu0 %v840_v25 }
  0xe6   : > { %v794_v41 = vmax.f32 %v762_v14, 0.0  ;;  %1022 = vmatprep.subr.bf16.mxu0 %v847_v53  ;;  %v812_v0 = vmul.f32 %v780_v12, %v520_v19  ;;  %v500_v25 = vsub.f32 1.0, %v468_v10 }
  0xe7   : > { %v779_v22 = vmax.f32 %v747_v35, 0.0  ;;  %v713_v42 = vand.u32 2147483647, %v681_v37  ;;  %v839_v44 = vpack.c.bf16 %v814_v4, %v813_v2  ;;  %v454_v47 = vand.u32 2147483647, %v422_v50 }
  0xe8   : > { %v826_v45 = vmul.f32 %v794_v41, %v534_v36  ;;  %v571_v18 = vpop.permute.xlu0 %570  ;;  %v532_v2 = vmax.f32 %v500_v25, 0.0  ;;  %v451_v50 = vand.u32 2147483647, %v419_v8 }
  0xe9   : > { %v811_v1 = vmul.f32 %v779_v22, %v1565_v27  ;;  %v745_v49 = vsub.f32 1.0, %v713_v42  ;;  %v583_v51 = vpop.permute.xlu1 %582  ;;  %1023 = vmatpush3.bf16.msra.mxu0 %v839_v44  ;;  %v486_v34 = vsub.f32 1.0, %v454_v47  ;;  %v679_v26 = vsub.f32 %v1460_v29, %v571_v18 }
  0xea   : > { %v682_v46 = vsub.f32 %v1460_v29, %v583_v51  ;;  %1024 = vmatprep.subr.bf16.mxu0 %v846_v48  ;;  %v845_v59 = vpack.c.bf16 %v826_v45, %v825_v52  ;;  %v483_v42 = vsub.f32 1.0, %v451_v50 }
  0xeb   : > { %v838_v53 = vpack.c.bf16 %v812_v0, %v811_v1  ;;  %v777_v55 = vmax.f32 %v745_v49, 0.0  ;;  %v518_v61 = vmax.f32 %v486_v34, 0.0  ;;  %v711_v37 = vand.u32 2147483647, %v679_v26 }
  0xec   : > { %v714_v56 = vand.u32 2147483647, %v682_v46  ;;  %v515_v48 = vmax.f32 %v483_v42, 0.0  ;;  %v434_v46 = vsub.f32 %v1462_v30, %v1504_v13 }
  0xed   : > { %1025 = vmatpush3.bf16.msra.mxu0 %v838_v53  ;;  %v809_v62 = vmul.f32 %v777_v55, %v517_v54  ;;  %v743_v11 = vsub.f32 1.0, %v711_v37 }
  0xee   : > { %v746_v36 = vsub.f32 1.0, %v714_v56  ;;  %v366_v60 = vpop.permute.xlu1 %365  ;;  %1026 = vmatprep.subr.bf16.mxu0 %v845_v59 }
  0xef   : > { %v435_v4 = vsub.f32 %v1462_v30, %v366_v60  ;;  %v775_v0 = vmax.f32 %v743_v11, 0.0 }
  0xf0   : > { %v778_v27 = vmax.f32 %v746_v36, 0.0  ;;  %v466_v36 = vand.u32 2147483647, %v434_v46 }
  0xf1   : > { %v467_v16 = vand.u32 2147483647, %v435_v4  ;;  %v807_v54 = vmul.f32 %v775_v0, %v515_v48 }
  0xf2   : > { %v810_v3 = vmul.f32 %v778_v27, %v518_v61  ;;  %v498_v4 = vsub.f32 1.0, %v466_v36 }
  0xf3   : > { %v635_v5 = vpop.permute.xlu1 %634  ;;  %v499_v12 = vsub.f32 1.0, %v467_v16 }
  0xf4   : > { %v695_v9 = vsub.f32 %v1460_v29, %v635_v5  ;;  %v837_v7 = vpack.c.bf16 %v810_v3, %v809_v62  ;;  %v563_v62 = vpop.permute.xlu0 %562 }
  0xf5   : > { %v531_v38 = vmax.f32 %v499_v12, 0.0  ;;  %v677_v13 = vsub.f32 %v1460_v29, %v563_v62 }
  0xf6   : > { %v727_v17 = vand.u32 2147483647, %v695_v9  ;;  %1027 = vmatpush3.bf16.msra.mxu0 %v837_v7  ;;  %v417_v7 = vsub.f32 %v1462_v30, %v1508_v15 }
  0xf7   : > { %v639_v20 = vpop.permute.xlu1 %638 }
  0xf8   : > { %v759_v23 = vsub.f32 1.0, %v727_v17  ;;  %v696_v24 = vsub.f32 %v1460_v29, %v639_v20  ;;  %v530_v20 = vmax.f32 %v498_v4, 0.0  ;;  %v449_v8 = vand.u32 2147483647, %v417_v7 }
  0xfa   : > { %v728_v28 = vand.u32 2147483647, %v696_v24  ;;  %v791_v14 = vmax.f32 %v759_v23, 0.0  ;;  %v709_v23 = vand.u32 2147483647, %v677_v13 }
  0xfc   : > { %v760_v32 = vsub.f32 1.0, %v728_v28  ;;  %v291_v33 = vpop.permute.xlu1 %290  ;;  %v823_v40 = vmul.f32 %v791_v14, %v531_v38 }
  0xfd   : > { %v420_v35 = vsub.f32 %v1462_v30, %v291_v33 }
  0xfe   : > { %v792_v39 = vmax.f32 %v760_v32, 0.0  ;;  %v741_v32 = vsub.f32 1.0, %v709_v23 }
  0xff   : > { %v452_v19 = vand.u32 2147483647, %v420_v35  ;;  %v481_v35 = vsub.f32 1.0, %v449_v8 }
 0x100   : > { %v824_v41 = vmul.f32 %v792_v39, %v532_v2  ;;  %v773_v37 = vmax.f32 %v741_v32, 0.0 }
 0x101   : > { %v575_v22 = vpop.permute.xlu1 %574  ;;  %v484_v45 = vsub.f32 1.0, %v452_v19 }
 0x102   : > { %v680_v44 = vsub.f32 %v1460_v29, %v575_v22  ;;  %v844_v6 = vpack.c.bf16 %v824_v41, %v823_v40  ;;  %v513_v40 = vmax.f32 %v481_v35, 0.0  ;;  %v432_v22 = vsub.f32 %v1462_v30, %v1519_v21 }
 0x103   : > { %v516_v51 = vmax.f32 %v484_v45, 0.0 }
 0x104   : > { %v712_v47 = vand.u32 2147483647, %v680_v44  ;;  %1028 = vmatprep.subr.bf16.mxu0 %v844_v6  ;;  %v805_v42 = vmul.f32 %v773_v37, %v513_v40  ;;  %v464_v48 = vand.u32 2147483647, %v432_v22 }
 0x106   : > { %v744_v1 = vsub.f32 1.0, %v712_v47  ;;  %v356_v49 = vpop.permute.xlu1 %355 }
 0x107   : > { %v433_v34 = vsub.f32 %v1462_v30, %v356_v49  ;;  %v555_v49 = vpop.permute.xlu0 %554 }
 0x108   : > { %v776_v52 = vmax.f32 %v744_v1, 0.0  ;;  %v675_v21 = vsub.f32 %v1460_v29, %v555_v49 }
 0x109   : > { %v465_v60 = vand.u32 2147483647, %v433_v34 }
 0x10a   : > { %v808_v53 = vmul.f32 %v776_v52, %v516_v51  ;;  %v707_v62 = vand.u32 2147483647, %v675_v21 }
 0x10b   : > { %v627_v55 = vpop.permute.xlu1 %626  ;;  %v497_v5 = vsub.f32 1.0, %v465_v60 }
 0x10c   : > { %v693_v56 = vsub.f32 %v1460_v29, %v627_v55  ;;  %v836_v59 = vpack.c.bf16 %v808_v53, %v807_v54  ;;  %v496_v54 = vsub.f32 1.0, %v464_v48  ;;  %v415_v55 = vsub.f32 %v1462_v30, %v1526_v31 }
 0x10d   : > { %v529_v24 = vmax.f32 %v497_v5, 0.0  ;;  %v739_v7 = vsub.f32 1.0, %v707_v62 }
 0x10e   : > { %v725_v61 = vand.u32 2147483647, %v693_v56  ;;  %1029 = vmatpush3.bf16.msra.mxu0 %v836_v59 }
 0x10f   : > { %v631_v27 = vpop.permute.xlu1 %630 }
 0x110   : > { %v757_v63 = vsub.f32 1.0, %v725_v61  ;;  %v694_v3 = vsub.f32 %v1460_v29, %v631_v27  ;;  %v528_v61 = vmax.f32 %v496_v54, 0.0 }
 0x112   : > { %v726_v9 = vand.u32 2147483647, %v694_v3  ;;  %v789_v10 = vmax.f32 %v757_v63, 0.0  ;;  %v447_v3 = vand.u32 2147483647, %v415_v55 }
 0x114   : > { %v758_v16 = vsub.f32 1.0, %v726_v9  ;;  %v281_v17 = vpop.permute.xlu1 %280  ;;  %v821_v26 = vmul.f32 %v789_v10, %v529_v24 }
 0x115   : > { %v418_v18 = vsub.f32 %v1462_v30, %v281_v17  ;;  %v479_v17 = vsub.f32 1.0, %v447_v3 }
 0x116   : > { %v790_v25 = vmax.f32 %v758_v16, 0.0 }
 0x117   : > { %v450_v28 = vand.u32 2147483647, %v418_v18 }
 0x118   : > { %v822_v12 = vmul.f32 %v790_v25, %v530_v20  ;;  %v771_v20 = vmax.f32 %v739_v7, 0.0  ;;  %v511_v25 = vmax.f32 %v479_v17, 0.0 }
 0x119   : > { %v567_v14 = vpop.permute.xlu1 %566  ;;  %v482_v15 = vsub.f32 1.0, %v450_v28 }
 0x11a   : > { %v678_v33 = vsub.f32 %v1460_v29, %v567_v14  ;;  %v843_v2 = vpack.c.bf16 %v822_v12, %v821_v26  ;;  %v430_v12 = vsub.f32 %v1462_v30, %v1536_v43  ;;  %v803_v28 = vmul.f32 %v771_v20, %v511_v25 }
 0x11b   : > { %v514_v41 = vmax.f32 %v482_v15, 0.0 }
 0x11c   : > { %v710_v50 = vand.u32 2147483647, %v678_v33  ;;  %1030 = vmatprep.subr.bf16.mxu0 %v843_v2  ;;  %v462_v15 = vand.u32 2147483647, %v430_v12 }
 0x11e   : > { %v742_v38 = vsub.f32 1.0, %v710_v50  ;;  %v346_v39 = vpop.permute.xlu1 %345 }
 0x11f   : > { %v431_v44 = vsub.f32 %v1462_v30, %v346_v39 }
 0x120   : > { %v774_v19 = vmax.f32 %v742_v38, 0.0  ;;  %v547_v38 = vpop.permute.xlu0 %546 }
 0x121   : > { %v463_v0 = vand.u32 2147483647, %v431_v44  ;;  %v673_v43 = vsub.f32 %v1460_v29, %v547_v38 }
 0x122   : > { %v806_v11 = vmul.f32 %v774_v19, %v514_v41  ;;  %v494_v19 = vsub.f32 1.0, %v462_v15 }
 0x123   : > { %v619_v6 = vpop.permute.xlu1 %618  ;;  %v495_v53 = vsub.f32 1.0, %v463_v0  ;;  %v705_v0 = vand.u32 2147483647, %v673_v43 }
 0x124   : > { %v691_v45 = vsub.f32 %v1460_v29, %v619_v6  ;;  %v835_v47 = vpack.c.bf16 %v806_v11, %v805_v42  ;;  %v413_v11 = vsub.f32 %v1462_v30, %v1548_v57  ;;  %v526_v48 = vmax.f32 %v494_v19, 0.0 }
 0x125   : > { %v527_v27 = vmax.f32 %v495_v53, 0.0  ;;  %v737_v53 = vsub.f32 1.0, %v705_v0 }
 0x126   : > { %v723_v1 = vand.u32 2147483647, %v691_v45  ;;  %1031 = vmatpush3.bf16.msra.mxu0 %v835_v47 }
 0x127   : > { %v623_v51 = vpop.permute.xlu1 %622 }
 0x128   : > { %v755_v52 = vsub.f32 1.0, %v723_v1  ;;  %v692_v46 = vsub.f32 %v1460_v29, %v623_v51  ;;  %v445_v51 = vand.u32 2147483647, %v413_v11 }
 0x12a   : > { %v724_v34 = vand.u32 2147483647, %v692_v46  ;;  %v787_v56 = vmax.f32 %v755_v52, 0.0  ;;  %v477_v57 = vsub.f32 1.0, %v445_v51 }
 0x12c   : > { %v756_v59 = vsub.f32 1.0, %v724_v34  ;;  %v271_v36 = vpop.permute.xlu1 %270  ;;  %v819_v4 = vmul.f32 %v787_v56, %v527_v27 }
 0x12d   : > { %v416_v60 = vsub.f32 %v1462_v30, %v271_v36 }
 0x12e   : > { %v788_v63 = vmax.f32 %v756_v59, 0.0 }
 0x12f   : > { %v448_v5 = vand.u32 2147483647, %v416_v60  ;;  %v509_v60 = vmax.f32 %v477_v57, 0.0 }
 0x130   : > { %v820_v13 = vmul.f32 %v788_v63, %v528_v61 }
 0x131   : > { %v559_v9 = vpop.permute.xlu1 %558  ;;  %v480_v31 = vsub.f32 1.0, %v448_v5 }
 0x132   : > { %v676_v10 = vsub.f32 %v1460_v29, %v559_v9  ;;  %v842_v16 = vpack.c.bf16 %v820_v13, %v819_v4  ;;  %v853_v4 = vpack.c.bf16 %v1550_v58, %v1550_v58 }
 0x133   : > { %v512_v8 = vmax.f32 %v480_v31, 0.0 }
 0x134   : > { %v708_v18 = vand.u32 2147483647, %v676_v10  ;;  %1032 = vmatprep.subr.bf16.mxu0 %v842_v16 }
 0x136   : > { %v740_v23 = vsub.f32 1.0, %v708_v18  ;;  %v336_v24 = vpop.permute.xlu1 %335 }
 0x137   : > { %v429_v32 = vsub.f32 %v1462_v30, %v336_v24 }
 0x138   : > { %v772_v26 = vmax.f32 %v740_v23, 0.0 }
 0x139   : > { %v461_v50 = vand.u32 2147483647, %v429_v32 }
 0x13a   : > { %v804_v14 = vmul.f32 %v772_v26, %v512_v8 }
 0x13b   : > { %v611_v33 = vpop.permute.xlu1 %610  ;;  %v493_v22 = vsub.f32 1.0, %v461_v50 }
 0x13c   : > { %v689_v2 = vsub.f32 %v1460_v29, %v611_v33  ;;  %v834_v35 = vpack.c.bf16 %v804_v14, %v803_v28 }
 0x13d   : > { %v525_v1 = vmax.f32 %v493_v22, 0.0 }
 0x13e   : > { %v721_v37 = vand.u32 2147483647, %v689_v2  ;;  %1033 = vmatpush3.bf16.msra.mxu0 %v834_v35 }
 0x13f   : > { %v615_v39 = vpop.permute.xlu1 %614 }
 0x140   : > { %v753_v40 = vsub.f32 1.0, %v721_v37  ;;  %v690_v41 = vsub.f32 %v1460_v29, %v615_v39 }
 0x142   : > { %v722_v42 = vand.u32 2147483647, %v690_v41  ;;  %v785_v44 = vmax.f32 %v753_v40, 0.0 }
 0x144   : > { %v754_v6 = vsub.f32 1.0, %v722_v42  ;;  %v261_v45 = vpop.permute.xlu1 %260  ;;  %v817_v52 = vmul.f32 %v785_v44, %v525_v1 }
 0x145   : > { %v414_v47 = vsub.f32 %v1462_v30, %v261_v45  ;;  %v769_v30 = vmax.f32 %v737_v53, 0.0 }
 0x146   : > { %v786_v49 = vmax.f32 %v754_v6, 0.0 }
 0x147   : > { %v446_v54 = vand.u32 2147483647, %v414_v47  ;;  %v801_v27 = vmul.f32 %v769_v30, %v509_v60 }
 0x148   : > { %v818_v46 = vmul.f32 %v786_v49, %v526_v48 }
 0x149   : > { %v551_v21 = vpop.permute.xlu1 %550  ;;  %v478_v56 = vsub.f32 1.0, %v446_v54 }
 0x14a   : > { %v674_v34 = vsub.f32 %v1460_v29, %v551_v21  ;;  %v841_v55 = vpack.c.bf16 %v818_v46, %v817_v52 }
 0x14b   : > { %v510_v61 = vmax.f32 %v478_v56, 0.0 }
 0x14c   : > { %v706_v59 = vand.u32 2147483647, %v674_v34  ;;  %1034 = vmatprep.subr.bf16.mxu0 %v841_v55 }
 0x14e   : > { %v738_v36 = vsub.f32 1.0, %v706_v59 }
 0x150   : > { %v770_v62 = vmax.f32 %v738_v36, 0.0 }
 0x152   : > { %v802_v63 = vmul.f32 %v770_v62, %v510_v61 }
 0x154   : > { %v833_v3 = vpack.c.bf16 %v802_v63, %v801_v27 }
 0x156   : > { %1035 = vmatpush3.bf16.msra.mxu0 %v833_v3 }
 0x159   : > { %888 = vmatmul.mubr.bf16.vlgmr.msra.gmra.mxu0 %v853_v4 }
 0x219   : > { %v1036_v29 = vpop.f32.mrf.mxu0 }
 0x21b   : > { %v1037_v13 = vpop.f32.mrf.mxu0 }
 0x21c   : > { %v1038_v5 = vadd.f32 %v1037_v13, %v1036_v29 }
 0x21d   : > { %v1039_v58 = vpop.f32.mrf.mxu0 }
 0x21e   : > { %895 = vst [vmem:[%s200_s28] sm:$0xf] %v1038_v5 }
 0x21f   : > { %v1040_v9 = vpop.f32.mrf.mxu0 }
 0x220   : > { %1162 = shalt.err (!%p1159_p7)
}
 0x221   : > { %s1163_s10 = scalar_lea.hbm %s1632_s6, 64  ;;  %s1167_s20 = scalar_lea.hbm %s1687_s3, 256 }
 0x222   : > { %p1164_p9 = scmp.ne.s32.totalorder %s1632_s6, %s1163_s10  ;;  %p1168_p12 = scmp.lt.s32.totalorder %s1632_s6, %s1687_s3 }
 0x223   : > { %p1169_p13 = scmp.lt.s32.totalorder %s1167_s20, %s1163_s10 }
 0x224   : > { %p1165_p10 = pnand %p1164_p9, %p1317_p3 }
 0x225   : > { %p1170_p0 = por %p1169_p13, %p1168_p12 }
 0x226   : > { %p1166_p11 = pneg %p1165_p10 }
 0x228   : > { %p1171_p1 = pnand %p1170_p0, %p1166_p11 }
 0x22a   : > { %1174 = shalt.err (!%p1171_p1)
}
 0x22b   : > { %1042 = dma.vmem_to_hbm [thread:$0]  (%p1317_p3), %s1634_s29, 64, %s1632_s6, %s897_s15  }
 0x22c PF: > { %p1048_p2 = scmp.ge.s32.totalorder %s1241_s19, 2  ;;  %s924_s28 = sand.u32 1, %s1213_s12  }
 0x22d   : > { %s925_s4 = scalar_lea.sflag [#allocation3], %s924_s28 }
 0x22e   : > { %p1045_p4 = pnand %p1048_p2, %p1326_p8 }
 0x230   : > { %p1046_p5 = pneg %p1045_p4 }
 0x232   : > { %1208 = dma.done.wait (%p1046_p5), %s925_s4, 64  }
 0x233   : > { %1210 = vsyncadd (%p1046_p5), %s925_s4, 4294967232  ;;  %s16_s19 = sadd.s32 1, %s1241_s19   ;;  %s1690_s12 = smov %s1217_s13 }
 0x234   : > { %p13_p6 = scmp.ge.s32.totalorder %s16_s19, 6   ;;  %s1691_s13 = smov %s1221_s14 }
 0x235   : > { %s1692_s14 = smov %s1335_s30  ;;  %s1693_s15 = smov %s1233_s17 }
 0x236   : > { %s1694_s16 = smov %s1237_s18  ;;  %s1695_s17 = smov %s1698_s22 }
 0x237   : > { %s1696_s18 = smov %s1702_s23  ;;  %15 = sbr.rel (!%p13_p6) target bundleno = 5 (0x5), region = 70 }
 0x23c   :  { %930 = vsyncpa [#allocation3], 1 }
 0x23d   :  { %932 = vsyncpa [#allocation3 + $0x1], 1 }

</bundles_post_ra>
